<compile_context>
chip_gen: v7x
topology: tpu7x:2x2x1
jax: 0.10.0
libtpu: 0.0.40
codegen_flags: <defaults>
</compile_context>

<pallas_src>
import functools
import math

import jax
import jax.numpy as jnp
from jax.experimental import pallas as pl
from jax.experimental.pallas import tpu as pltpu


def _round_up(x, m):
    return ((x + m - 1) // m) * m


def _vmem_limit_bytes():
    """Generation-dependent scoped-VMEM budget (<=48 MiB on v7x, <=96 MiB else)."""
    try:
        cap = int(pltpu.get_tpu_info().vmem_capacity_bytes)
    except Exception:
        cap = 64 * 1024 * 1024  # conservative: v7x physical VMEM
    return max(32 * 1024 * 1024, min(96 * 1024 * 1024, (cap * 3) // 4))


def _choose_tiles(n_pad):
    """Pick (TM rows, TK contraction) for adj @ support.

    n_pad is a multiple of 128; tiles must divide it.  Prefer large TK (big DMA
    bursts, amortized grid-step overhead) and >= 2 row tiles (megacore on v7x).
    """
    tm_cands = [t for t in (512, 256, 128) if n_pad % t == 0]
    tm = next((t for t in tm_cands if n_pad // t >= 2), tm_cands[-1])
    tk = next(t for t in (2048, 1024, 512, 256, 128) if n_pad % t == 0)
    return tm, tk


# ----------------------------- support = x @ W ------------------------------


def _support_kernel(x_ref, w_ref, out_ref, acc_ref):
    k = pl.program_id(1)

    @pl.when(k == 0)
    def _():
        acc_ref[...] = jnp.zeros_like(acc_ref)

    acc_ref[...] += jnp.dot(
        x_ref[...], w_ref[...], preferred_element_type=jnp.float32
    )

    @pl.when(k == pl.num_programs(1) - 1)
    def _():
        out_ref[...] = acc_ref[...].astype(out_ref.dtype)


def support_matmul(x, w, *, tm, out_dtype, vmem_limit):
    """x @ W, tiled over node rows and the f_in contraction axis (f32 acc)."""
    n, f_in = x.shape
    f_out = w.shape[1]
    tks = next(t for t in (2048, 1024, 512, 256, 128) if f_in % t == 0)
    return pl.pallas_call(
        _support_kernel,
        out_shape=jax.ShapeDtypeStruct((n, f_out), out_dtype),
        grid=(n // tm, f_in // tks),
        in_specs=[
            pl.BlockSpec((tm, tks), lambda i, k: (i, k)),
            pl.BlockSpec((tks, f_out), lambda i, k: (k, 0)),
        ],
        out_specs=pl.BlockSpec((tm, f_out), lambda i, k: (i, 0)),
        scratch_shapes=[pltpu.VMEM((tm, f_out), jnp.float32)],
        compiler_params=pltpu.CompilerParams(
            dimension_semantics=("parallel", "arbitrary"),
            vmem_limit_bytes=vmem_limit,
        ),
    )(x, w)


# ------------------------- out = act(adj @ support + b) ---------------------


def _aggregate_kernel(adj_ref, sup_ref, b_ref, out_ref, acc_ref, *,
                      activation, tk, resident):
    k = pl.program_id(1)

    @pl.when(k == 0)
    def _():
        acc_ref[...] = jnp.zeros_like(acc_ref)

    if resident:
        # support is fully VMEM-resident; slice the current contraction chunk.
        k0 = pl.multiple_of(k * tk, tk)
        sup = sup_ref[pl.ds(k0, tk), :]
    else:
        sup = sup_ref[...]

    acc_ref[...] += jnp.dot(
        adj_ref[...], sup, preferred_element_type=jnp.float32
    )

    @pl.when(k == pl.num_programs(1) - 1)
    def _():
        # f32 bias add + activation epilogue (EUP/VPU fill idle slots),
        # downcast only on the final store (v5e has no bf16 VPU/EUP).
        out = acc_ref[...] + b_ref[...]
        if activation == "relu":
            out = jnp.maximum(out, 0.0)
        elif activation == "sigmoid":
            out = jax.nn.sigmoid(out)
        out_ref[...] = out.astype(out_ref.dtype)


def aggregate(adj, support, bias2d, *, tm, tk, activation, out_dtype, vmem_limit):
    n = adj.shape[0]
    f_out = support.shape[1]

    # Decide whether support can live fully in VMEM (eliminates N/tm re-reads).
    adj_bytes = 2 * tm * tk * adj.dtype.itemsize                 # double-buffered
    out_bytes = 2 * tm * f_out * jnp.dtype(out_dtype).itemsize
    acc_bytes = tm * f_out * 4
    resident_bytes = 2 * n * f_out * support.dtype.itemsize      # conservative x2
    resident = (adj_bytes + out_bytes + acc_bytes + resident_bytes
                ) <= int(0.8 * vmem_limit)

    if resident:
        sup_spec = pl.BlockSpec((n, f_out), lambda i, k: (0, 0))
    else:
        sup_spec = pl.BlockSpec((tk, f_out), lambda i, k: (k, 0))

    kernel = functools.partial(_aggregate_kernel, activation=activation,
                               tk=tk, resident=resident)
    return pl.pallas_call(
        kernel,
        out_shape=jax.ShapeDtypeStruct((n, f_out), out_dtype),
        grid=(n // tm, n // tk),
        in_specs=[
            pl.BlockSpec((tm, tk), lambda i, k: (i, k)),
            sup_spec,
            pl.BlockSpec((1, f_out), lambda i, k: (0, 0)),
        ],
        out_specs=pl.BlockSpec((tm, f_out), lambda i, k: (i, 0)),
        scratch_shapes=[pltpu.VMEM((tm, f_out), jnp.float32)],
        compiler_params=pltpu.CompilerParams(
            dimension_semantics=("parallel", "arbitrary"),
            vmem_limit_bytes=vmem_limit,
        ),
    )(adj, support, bias2d)


def gcn_layer(adj_p, x_p, w_p, b_p, *, tm, tk, activation, out_dtype, vmem_limit):
    """One GraphConvolution layer: act(adj @ (x @ W) + b) on padded operands."""
    support = support_matmul(x_p, w_p, tm=tm, out_dtype=adj_p.dtype,
                             vmem_limit=vmem_limit)
    return aggregate(adj_p, support, b_p, tm=tm, tk=tk, activation=activation,
                     out_dtype=out_dtype, vmem_limit=vmem_limit)


def _gcn_forward(adj, x_p, w1_p, b1_p, w2_p, b2_p, *, node_num, n_pad, noutput,
                 tm, tk, compute_dtype, vmem_limit):
    # One-time pad + cast of adj; both layers reuse the same padded array.
    adj_p = jnp.zeros((n_pad, n_pad), compute_dtype).at[
        :node_num, :node_num].set(adj.astype(compute_dtype))

    # Layer 1: relu(adj @ (x @ W1) + b1), kept padded + compute_dtype.
    x1_p = gcn_layer(adj_p, x_p, w1_p, b1_p, tm=tm, tk=tk, activation="relu",
                     out_dtype=compute_dtype, vmem_limit=vmem_limit)
    # NOTE: pad rows of x1_p equal relu(b1) (bias leak); adj_p's zero pad
    # COLUMNS cancel them in layer 2 and the final slice drops pad rows.
    # dropout: identity at inference.

    # Layer 2: sigmoid(adj @ (x1 @ W2) + b2), f32 output.
    out_p = gcn_layer(adj_p, x1_p, w2_p, b2_p, tm=tm, tk=tk,
                      activation="sigmoid", out_dtype=jnp.float32,
                      vmem_limit=vmem_limit)
    return out_p[:node_num, :noutput]


# --------------------------------- model ------------------------------------


class GCNPallas:
    """Pallas port of pygcn GCN: x1 = relu(gc1(x, adj)); out = sigmoid(gc2(x1, adj))."""

    def __init__(self, nfeat, nhid1, noutput, dropout, node_num, key,
                 compute_dtype=jnp.bfloat16):
        k_emb, k_w1, k_b1, k_w2, k_b2 = jax.random.split(key, 5)

        # Embedding weight: pi/2 * U[0,1)  (matches torch.rand scaling).
        self.initial_state = (math.pi / 2) * jax.random.uniform(
            k_emb, (node_num, nfeat), dtype=jnp.float32)

        # GraphConvolution init: U(-stdv, stdv), stdv = 1/sqrt(out_features).
        stdv1 = 1.0 / math.sqrt(nhid1)
        self.w1 = jax.random.uniform(k_w1, (nfeat, nhid1), jnp.float32, -stdv1, stdv1)
        self.b1 = jax.random.uniform(k_b1, (nhid1,), jnp.float32, -stdv1, stdv1)
        stdv2 = 1.0 / math.sqrt(noutput)
        self.w2 = jax.random.uniform(k_w2, (nhid1, noutput), jnp.float32, -stdv2, stdv2)
        self.b2 = jax.random.uniform(k_b2, (noutput,), jnp.float32, -stdv2, stdv2)

        self.dropout = dropout  # inference mode -> identity
        self.compute_dtype = compute_dtype
        self.node_num, self.nfeat, self.nhid1, self.noutput = (
            node_num, nfeat, nhid1, noutput)

        # Padded geometry: node axis -> multiple of 128 only (tiles divide it),
        # feature axes -> multiples of 128 (lane-dense stores, full MXU tiles).
        self.n_pad = _round_up(node_num, 128)
        self.tm, self.tk = _choose_tiles(self.n_pad)
        self.fin_pad = _round_up(nfeat, 128)
        self.fhid_pad = _round_up(nhid1, 128)
        self.fout_pad = _round_up(noutput, 128)
        self.vmem_limit = _vmem_limit_bytes()

        cdt = compute_dtype
        # Zero-padded parameters, pre-cast once (exact: zero rows/cols are inert).
        self.x_p = jnp.zeros((self.n_pad, self.fin_pad), cdt).at[
            :node_num, :nfeat].set(self.initial_state.astype(cdt))
        self.w1_p = jnp.zeros((self.fin_pad, self.fhid_pad), cdt).at[
            :nfeat, :nhid1].set(self.w1.astype(cdt))
        self.w2_p = jnp.zeros((self.fhid_pad, self.fout_pad), cdt).at[
            :nhid1, :noutput].set(self.w2.astype(cdt))
        # Biases stay f32 (added onto the f32 accumulator in the epilogue).
        self.b1_p = jnp.zeros((1, self.fhid_pad), jnp.float32).at[
            0, :nhid1].set(self.b1)
        self.b2_p = jnp.zeros((1, self.fout_pad), jnp.float32).at[
            0, :noutput].set(self.b2)

        # jit so pad/cast/slice fuse instead of dispatching eagerly.
        self._forward = jax.jit(functools.partial(
            _gcn_forward,
            node_num=node_num, n_pad=self.n_pad, noutput=noutput,
            tm=self.tm, tk=self.tk, compute_dtype=cdt,
            vmem_limit=self.vmem_limit))

    def __call__(self, adj_matrix):
        return self._forward(adj_matrix.astype(jnp.float32), self.x_p,
                             self.w1_p, self.b1_p, self.w2_p, self.b2_p)


def reference_forward(model, adj):
    """Plain-JAX (f32, unpadded) reference for correctness check."""
    x = model.initial_state
    x1 = jnp.maximum(adj @ (x @ model.w1) + model.b1, 0.0)
    x2 = adj @ (x1 @ model.w2) + model.b2
    return jax.nn.sigmoid(x2)


if __name__ == "__main__":
    node_num = 8
    nfeat = 16
    nhid1 = 32
    noutput = 8
    dropout = 0.5

    key = jax.random.PRNGKey(0)
    k_model, k_adj = jax.random.split(key)

    # Deterministic symmetric row-normalized adjacency.
    a = jax.random.uniform(k_adj, (node_num, node_num), dtype=jnp.float32)
    adj = (a + a.T) / 2.0
    adj = adj / jnp.sum(adj, axis=1, keepdims=True)

    # float32 path: strict check against the plain-JAX reference.
    model_f32 = GCNPallas(nfeat, nhid1, noutput, dropout, node_num, k_model,
                          compute_dtype=jnp.float32)
    ref = reference_forward(model_f32, adj)
    out_f32 = jax.block_until_ready(model_f32(adj))
    assert out_f32.shape == (node_num, noutput)
    assert jnp.allclose(out_f32, ref, atol=1e-5, rtol=1e-5), float(
        jnp.max(jnp.abs(out_f32 - ref)))

    # Default (bf16 matmul inputs, f32 accumulation): halves adj HBM traffic.
    model = GCNPallas(nfeat, nhid1, noutput, dropout, node_num, k_model)
    out = jax.block_until_ready(model(adj))
    assert out.shape == (node_num, noutput)
    assert jnp.allclose(out, ref, atol=5e-2, rtol=0), float(
        jnp.max(jnp.abs(out - ref)))

    print("KERNEL_OK")
</pallas_src>

<mosaic_0001>
module attributes {stable_mosaic.version = 11 : i64} {
  func.func @_aggregate_kernel(%arg0: i32, %arg1: i32, %arg2: memref<128x128xf32, #tpu.memory_space<vmem>>, %arg3: memref<128x128xf32, #tpu.memory_space<vmem>>, %arg4: memref<1x128xf32, #tpu.memory_space<vmem>>, %arg5: memref<128x128xf32, #tpu.memory_space<vmem>>, %arg6: memref<128x128xf32, #tpu.memory_space<vmem>>) attributes {dimension_semantics = [#tpu.dimension_semantics<parallel>, #tpu.dimension_semantics<arbitrary>], iteration_bounds = array<i64: 1, 1>, scalar_prefetch = 0 : i64, scratch_operands = 1 : i64, tpu.core_type = #tpu.core_type<tc>, window_params = [{transform_indices = @transform_0, window_bounds = array<i64: 128, 128>}, {pipeline_mode = #tpu.pipeline_mode<synchronous>, transform_indices = @transform_1, window_bounds = array<i64: 128, 128>}, {pipeline_mode = #tpu.pipeline_mode<synchronous>, transform_indices = @transform_2, window_bounds = array<i64: 1, 128>}, {transform_indices = @transform_3, window_bounds = array<i64: 128, 128>}]} {
    %c0_i32 = arith.constant 0 : i32
    %0 = arith.cmpi eq, %arg1, %c0_i32 : i32
    %1 = arith.extui %0 : i1 to i32
    %c0_i32_0 = arith.constant 0 : i32
    %2 = arith.cmpi ne, %1, %c0_i32_0 : i32
    scf.if %2 {
      %cst_9 = arith.constant 0.000000e+00 : f32
      %15 = vector.broadcast %cst_9 : f32 to vector<128x128xf32>
      %c0_10 = arith.constant 0 : index
      %c0_11 = arith.constant 0 : index
      %16 = vector.load %arg6[%c0_10, %c0_11] : memref<128x128xf32, #tpu.memory_space<vmem>>, vector<128x128xf32>
      tpu.vector_store %arg6[%c0_10, %c0_11], %15 {strides = array<i32>} : memref<128x128xf32, #tpu.memory_space<vmem>>, vector<128x128xf32>,
    } else {
    }
    %c128_i32 = arith.constant 128 : i32
    %3 = arith.muli %arg1, %c128_i32 : i32
    %4 = tpu.assume_multiple %3, 128 : i32
    %5 = arith.index_cast %4 : i32 to index
    %c0 = arith.constant 0 : index
    %6 = vector.load %arg3[%5, %c0] : memref<128x128xf32, #tpu.memory_space<vmem>>, vector<128x128xf32>
    %c0_1 = arith.constant 0 : index
    %c0_2 = arith.constant 0 : index
    %7 = vector.load %arg6[%c0_1, %c0_2] : memref<128x128xf32, #tpu.memory_space<vmem>>, vector<128x128xf32>
    %c0_3 = arith.constant 0 : index
    %c0_4 = arith.constant 0 : index
    %8 = vector.load %arg2[%c0_3, %c0_4] : memref<128x128xf32, #tpu.memory_space<vmem>>, vector<128x128xf32>
    %cst = arith.constant dense<0.000000e+00> : vector<128x128xf32>
    %9 = tpu.matmul %8, %6, %cst {dimension_numbers = #tpu.dot_dimension_numbers<[1], [0], [0], [1], [0, 0, 1, 1], [], []>} : vector<128x128xf32>, vector<128x128xf32>, vector<128x128xf32> -> vector<128x128xf32>
    %10 = arith.addf %7, %9 : vector<128x128xf32>
    %c0_5 = arith.constant 0 : index
    %c0_6 = arith.constant 0 : index
    %11 = vector.load %arg6[%c0_5, %c0_6] : memref<128x128xf32, #tpu.memory_space<vmem>>, vector<128x128xf32>
    tpu.vector_store %arg6[%c0_5, %c0_6], %10 {strides = array<i32>} : memref<128x128xf32, #tpu.memory_space<vmem>>, vector<128x128xf32>,
    %c0_i32_7 = arith.constant 0 : i32
    %12 = arith.cmpi eq, %arg1, %c0_i32_7 : i32
    %13 = arith.extui %12 : i1 to i32
    %c0_i32_8 = arith.constant 0 : i32
    %14 = arith.cmpi ne, %13, %c0_i32_8 : i32
    scf.if %14 {
      %c0_9 = arith.constant 0 : index
      %c0_10 = arith.constant 0 : index
      %15 = vector.load %arg6[%c0_9, %c0_10] : memref<128x128xf32, #tpu.memory_space<vmem>>, vector<128x128xf32>
      %c0_11 = arith.constant 0 : index
      %c0_12 = arith.constant 0 : index
      %16 = vector.load %arg4[%c0_11, %c0_12] : memref<1x128xf32, #tpu.memory_space<vmem>>, vector<1x128xf32>
      %17 = vector.broadcast %16 : vector<1x128xf32> to vector<128x128xf32>
      %18 = arith.addf %15, %17 : vector<128x128xf32>
      %cst_13 = arith.constant 0.000000e+00 : f32
      %19 = vector.broadcast %cst_13 : f32 to vector<128x128xf32>
      %20 = arith.maximumf %18, %19 : vector<128x128xf32>
      %c0_14 = arith.constant 0 : index
      %c0_15 = arith.constant 0 : index
      %21 = vector.load %arg5[%c0_14, %c0_15] : memref<128x128xf32, #tpu.memory_space<vmem>>, vector<128x128xf32>
      tpu.vector_store %arg5[%c0_14, %c0_15], %20 {strides = array<i32>} : memref<128x128xf32, #tpu.memory_space<vmem>>, vector<128x128xf32>,
    } else {
    }
    return
  }
  func.func @transform_0(%arg0: i32, %arg1: i32) -> (i32, i32) {
    %c0_i32 = arith.constant 0 : i32
    return %arg0, %arg1 : i32, i32
  }
  func.func @transform_1(%arg0: i32, %arg1: i32) -> (i32, i32) {
    %c0_i32 = arith.constant 0 : i32
    %c0_i32_0 = arith.constant 0 : i32
    %c0_i32_1 = arith.constant 0 : i32
    return %c0_i32, %c0_i32_0 : i32, i32
  }
  func.func @transform_2(%arg0: i32, %arg1: i32) -> (i32, i32) {
    %c0_i32 = arith.constant 0 : i32
    %c0_i32_0 = arith.constant 0 : i32
    %c0_i32_1 = arith.constant 0 : i32
    return %c0_i32, %c0_i32_0 : i32, i32
  }
  func.func @transform_3(%arg0: i32, %arg1: i32) -> (i32, i32) {
    %c0_i32 = arith.constant 0 : i32
    %c0_i32_0 = arith.constant 0 : i32
    return %arg0, %c0_i32 : i32, i32
  }
}

module attributes {stable_mosaic.version = 11 : i64} {
  func.func @_support_kernel(%arg0: i32, %arg1: i32, %arg2: memref<128x128xf32, #tpu.memory_space<vmem>>, %arg3: memref<128x128xf32, #tpu.memory_space<vmem>>, %arg4: memref<128x128xf32, #tpu.memory_space<vmem>>, %arg5: memref<128x128xf32, #tpu.memory_space<vmem>>) attributes {dimension_semantics = [#tpu.dimension_semantics<parallel>, #tpu.dimension_semantics<arbitrary>], iteration_bounds = array<i64: 1, 1>, scalar_prefetch = 0 : i64, scratch_operands = 1 : i64, tpu.core_type = #tpu.core_type<tc>, window_params = [{transform_indices = @transform_0, window_bounds = array<i64: 128, 128>}, {transform_indices = @transform_1, window_bounds = array<i64: 128, 128>}, {transform_indices = @transform_2, window_bounds = array<i64: 128, 128>}]} {
    %c0_i32 = arith.constant 0 : i32
    %0 = arith.cmpi eq, %arg1, %c0_i32 : i32
    %1 = arith.extui %0 : i1 to i32
    %c0_i32_0 = arith.constant 0 : i32
    %2 = arith.cmpi ne, %1, %c0_i32_0 : i32
    scf.if %2 {
      %cst_10 = arith.constant 0.000000e+00 : f32
      %12 = vector.broadcast %cst_10 : f32 to vector<128x128xf32>
      %c0_11 = arith.constant 0 : index
      %c0_12 = arith.constant 0 : index
      %13 = vector.load %arg5[%c0_11, %c0_12] : memref<128x128xf32, #tpu.memory_space<vmem>>, vector<128x128xf32>
      tpu.vector_store %arg5[%c0_11, %c0_12], %12 {strides = array<i32>} : memref<128x128xf32, #tpu.memory_space<vmem>>, vector<128x128xf32>,
    } else {
    }
    %c0 = arith.constant 0 : index
    %c0_1 = arith.constant 0 : index
    %3 = vector.load %arg5[%c0, %c0_1] : memref<128x128xf32, #tpu.memory_space<vmem>>, vector<128x128xf32>
    %c0_2 = arith.constant 0 : index
    %c0_3 = arith.constant 0 : index
    %4 = vector.load %arg2[%c0_2, %c0_3] : memref<128x128xf32, #tpu.memory_space<vmem>>, vector<128x128xf32>
    %c0_4 = arith.constant 0 : index
    %c0_5 = arith.constant 0 : index
    %5 = vector.load %arg3[%c0_4, %c0_5] : memref<128x128xf32, #tpu.memory_space<vmem>>, vector<128x128xf32>
    %cst = arith.constant dense<0.000000e+00> : vector<128x128xf32>
    %6 = tpu.matmul %4, %5, %cst {dimension_numbers = #tpu.dot_dimension_numbers<[1], [0], [0], [1], [0, 0, 1, 1], [], []>} : vector<128x128xf32>, vector<128x128xf32>, vector<128x128xf32> -> vector<128x128xf32>
    %7 = arith.addf %3, %6 : vector<128x128xf32>
    %c0_6 = arith.constant 0 : index
    %c0_7 = arith.constant 0 : index
    %8 = vector.load %arg5[%c0_6, %c0_7] : memref<128x128xf32, #tpu.memory_space<vmem>>, vector<128x128xf32>
    tpu.vector_store %arg5[%c0_6, %c0_7], %7 {strides = array<i32>} : memref<128x128xf32, #tpu.memory_space<vmem>>, vector<128x128xf32>,
    %c0_i32_8 = arith.constant 0 : i32
    %9 = arith.cmpi eq, %arg1, %c0_i32_8 : i32
    %10 = arith.extui %9 : i1 to i32
    %c0_i32_9 = arith.constant 0 : i32
    %11 = arith.cmpi ne, %10, %c0_i32_9 : i32
    scf.if %11 {
      %c0_10 = arith.constant 0 : index
      %c0_11 = arith.constant 0 : index
      %12 = vector.load %arg5[%c0_10, %c0_11] : memref<128x128xf32, #tpu.memory_space<vmem>>, vector<128x128xf32>
      %c0_12 = arith.constant 0 : index
      %c0_13 = arith.constant 0 : index
      %13 = vector.load %arg4[%c0_12, %c0_13] : memref<128x128xf32, #tpu.memory_space<vmem>>, vector<128x128xf32>
      tpu.vector_store %arg4[%c0_12, %c0_13], %12 {strides = array<i32>} : memref<128x128xf32, #tpu.memory_space<vmem>>, vector<128x128xf32>,
    } else {
    }
    return
  }
  func.func @transform_0(%arg0: i32, %arg1: i32) -> (i32, i32) {
    %c0_i32 = arith.constant 0 : i32
    return %arg0, %arg1 : i32, i32
  }
  func.func @transform_1(%arg0: i32, %arg1: i32) -> (i32, i32) {
    %c0_i32 = arith.constant 0 : i32
    %c0_i32_0 = arith.constant 0 : i32
    return %arg1, %c0_i32 : i32, i32
  }
  func.func @transform_2(%arg0: i32, %arg1: i32) -> (i32, i32) {
    %c0_i32 = arith.constant 0 : i32
    %c0_i32_0 = arith.constant 0 : i32
    return %arg0, %c0_i32 : i32, i32
  }
}

module attributes {stable_mosaic.version = 11 : i64} {
  func.func @_support_kernel(%arg0: i32, %arg1: i32, %arg2: memref<128x128xf32, #tpu.memory_space<vmem>>, %arg3: memref<128x128xf32, #tpu.memory_space<vmem>>, %arg4: memref<128x128xf32, #tpu.memory_space<vmem>>, %arg5: memref<128x128xf32, #tpu.memory_space<vmem>>) attributes {dimension_semantics = [#tpu.dimension_semantics<parallel>, #tpu.dimension_semantics<arbitrary>], iteration_bounds = array<i64: 1, 1>, scalar_prefetch = 0 : i64, scratch_operands = 1 : i64, tpu.core_type = #tpu.core_type<tc>, window_params = [{transform_indices = @transform_0, window_bounds = array<i64: 128, 128>}, {transform_indices = @transform_1, window_bounds = array<i64: 128, 128>}, {transform_indices = @transform_2, window_bounds = array<i64: 128, 128>}]} {
    %c0_i32 = arith.constant 0 : i32
    %0 = arith.cmpi eq, %arg1, %c0_i32 : i32
    %1 = arith.extui %0 : i1 to i32
    %c0_i32_0 = arith.constant 0 : i32
    %2 = arith.cmpi ne, %1, %c0_i32_0 : i32
    scf.if %2 {
      %cst_10 = arith.constant 0.000000e+00 : f32
      %12 = vector.broadcast %cst_10 : f32 to vector<128x128xf32>
      %c0_11 = arith.constant 0 : index
      %c0_12 = arith.constant 0 : index
      %13 = vector.load %arg5[%c0_11, %c0_12] : memref<128x128xf32, #tpu.memory_space<vmem>>, vector<128x128xf32>
      tpu.vector_store %arg5[%c0_11, %c0_12], %12 {strides = array<i32>} : memref<128x128xf32, #tpu.memory_space<vmem>>, vector<128x128xf32>,
    } else {
    }
    %c0 = arith.constant 0 : index
    %c0_1 = arith.constant 0 : index
    %3 = vector.load %arg5[%c0, %c0_1] : memref<128x128xf32, #tpu.memory_space<vmem>>, vector<128x128xf32>
    %c0_2 = arith.constant 0 : index
    %c0_3 = arith.constant 0 : index
    %4 = vector.load %arg2[%c0_2, %c0_3] : memref<128x128xf32, #tpu.memory_space<vmem>>, vector<128x128xf32>
    %c0_4 = arith.constant 0 : index
    %c0_5 = arith.constant 0 : index
    %5 = vector.load %arg3[%c0_4, %c0_5] : memref<128x128xf32, #tpu.memory_space<vmem>>, vector<128x128xf32>
    %cst = arith.constant dense<0.000000e+00> : vector<128x128xf32>
    %6 = tpu.matmul %4, %5, %cst {dimension_numbers = #tpu.dot_dimension_numbers<[1], [0], [0], [1], [0, 0, 1, 1], [], []>} : vector<128x128xf32>, vector<128x128xf32>, vector<128x128xf32> -> vector<128x128xf32>
    %7 = arith.addf %3, %6 : vector<128x128xf32>
    %c0_6 = arith.constant 0 : index
    %c0_7 = arith.constant 0 : index
    %8 = vector.load %arg5[%c0_6, %c0_7] : memref<128x128xf32, #tpu.memory_space<vmem>>, vector<128x128xf32>
    tpu.vector_store %arg5[%c0_6, %c0_7], %7 {strides = array<i32>} : memref<128x128xf32, #tpu.memory_space<vmem>>, vector<128x128xf32>,
    %c0_i32_8 = arith.constant 0 : i32
    %9 = arith.cmpi eq, %arg1, %c0_i32_8 : i32
    %10 = arith.extui %9 : i1 to i32
    %c0_i32_9 = arith.constant 0 : i32
    %11 = arith.cmpi ne, %10, %c0_i32_9 : i32
    scf.if %11 {
      %c0_10 = arith.constant 0 : index
      %c0_11 = arith.constant 0 : index
      %12 = vector.load %arg5[%c0_10, %c0_11] : memref<128x128xf32, #tpu.memory_space<vmem>>, vector<128x128xf32>
      %c0_12 = arith.constant 0 : index
      %c0_13 = arith.constant 0 : index
      %13 = vector.load %arg4[%c0_12, %c0_13] : memref<128x128xf32, #tpu.memory_space<vmem>>, vector<128x128xf32>
      tpu.vector_store %arg4[%c0_12, %c0_13], %12 {strides = array<i32>} : memref<128x128xf32, #tpu.memory_space<vmem>>, vector<128x128xf32>,
    } else {
    }
    return
  }
  func.func @transform_0(%arg0: i32, %arg1: i32) -> (i32, i32) {
    %c0_i32 = arith.constant 0 : i32
    return %arg0, %arg1 : i32, i32
  }
  func.func @transform_1(%arg0: i32, %arg1: i32) -> (i32, i32) {
    %c0_i32 = arith.constant 0 : i32
    %c0_i32_0 = arith.constant 0 : i32
    return %arg1, %c0_i32 : i32, i32
  }
  func.func @transform_2(%arg0: i32, %arg1: i32) -> (i32, i32) {
    %c0_i32 = arith.constant 0 : i32
    %c0_i32_0 = arith.constant 0 : i32
    return %arg0, %c0_i32 : i32, i32
  }
}

module attributes {stable_mosaic.version = 11 : i64} {
  func.func @_aggregate_kernel(%arg0: i32, %arg1: i32, %arg2: memref<128x128xf32, #tpu.memory_space<vmem>>, %arg3: memref<128x128xf32, #tpu.memory_space<vmem>>, %arg4: memref<1x128xf32, #tpu.memory_space<vmem>>, %arg5: memref<128x128xf32, #tpu.memory_space<vmem>>, %arg6: memref<128x128xf32, #tpu.memory_space<vmem>>) attributes {dimension_semantics = [#tpu.dimension_semantics<parallel>, #tpu.dimension_semantics<arbitrary>], iteration_bounds = array<i64: 1, 1>, scalar_prefetch = 0 : i64, scratch_operands = 1 : i64, tpu.core_type = #tpu.core_type<tc>, window_params = [{transform_indices = @transform_0, window_bounds = array<i64: 128, 128>}, {pipeline_mode = #tpu.pipeline_mode<synchronous>, transform_indices = @transform_1, window_bounds = array<i64: 128, 128>}, {pipeline_mode = #tpu.pipeline_mode<synchronous>, transform_indices = @transform_2, window_bounds = array<i64: 1, 128>}, {transform_indices = @transform_3, window_bounds = array<i64: 128, 128>}]} {
    %c0_i32 = arith.constant 0 : i32
    %0 = arith.cmpi eq, %arg1, %c0_i32 : i32
    %1 = arith.extui %0 : i1 to i32
    %c0_i32_0 = arith.constant 0 : i32
    %2 = arith.cmpi ne, %1, %c0_i32_0 : i32
    scf.if %2 {
      %cst_9 = arith.constant 0.000000e+00 : f32
      %15 = vector.broadcast %cst_9 : f32 to vector<128x128xf32>
      %c0_10 = arith.constant 0 : index
      %c0_11 = arith.constant 0 : index
      %16 = vector.load %arg6[%c0_10, %c0_11] : memref<128x128xf32, #tpu.memory_space<vmem>>, vector<128x128xf32>
      tpu.vector_store %arg6[%c0_10, %c0_11], %15 {strides = array<i32>} : memref<128x128xf32, #tpu.memory_space<vmem>>, vector<128x128xf32>,
    } else {
    }
    %c128_i32 = arith.constant 128 : i32
    %3 = arith.muli %arg1, %c128_i32 : i32
    %4 = tpu.assume_multiple %3, 128 : i32
    %5 = arith.index_cast %4 : i32 to index
    %c0 = arith.constant 0 : index
    %6 = vector.load %arg3[%5, %c0] : memref<128x128xf32, #tpu.memory_space<vmem>>, vector<128x128xf32>
    %c0_1 = arith.constant 0 : index
    %c0_2 = arith.constant 0 : index
    %7 = vector.load %arg6[%c0_1, %c0_2] : memref<128x128xf32, #tpu.memory_space<vmem>>, vector<128x128xf32>
    %c0_3 = arith.constant 0 : index
    %c0_4 = arith.constant 0 : index
    %8 = vector.load %arg2[%c0_3, %c0_4] : memref<128x128xf32, #tpu.memory_space<vmem>>, vector<128x128xf32>
    %cst = arith.constant dense<0.000000e+00> : vector<128x128xf32>
    %9 = tpu.matmul %8, %6, %cst {dimension_numbers = #tpu.dot_dimension_numbers<[1], [0], [0], [1], [0, 0, 1, 1], [], []>} : vector<128x128xf32>, vector<128x128xf32>, vector<128x128xf32> -> vector<128x128xf32>
    %10 = arith.addf %7, %9 : vector<128x128xf32>
    %c0_5 = arith.constant 0 : index
    %c0_6 = arith.constant 0 : index
    %11 = vector.load %arg6[%c0_5, %c0_6] : memref<128x128xf32, #tpu.memory_space<vmem>>, vector<128x128xf32>
    tpu.vector_store %arg6[%c0_5, %c0_6], %10 {strides = array<i32>} : memref<128x128xf32, #tpu.memory_space<vmem>>, vector<128x128xf32>,
    %c0_i32_7 = arith.constant 0 : i32
    %12 = arith.cmpi eq, %arg1, %c0_i32_7 : i32
    %13 = arith.extui %12 : i1 to i32
    %c0_i32_8 = arith.constant 0 : i32
    %14 = arith.cmpi ne, %13, %c0_i32_8 : i32
    scf.if %14 {
      %c0_9 = arith.constant 0 : index
      %c0_10 = arith.constant 0 : index
      %15 = vector.load %arg6[%c0_9, %c0_10] : memref<128x128xf32, #tpu.memory_space<vmem>>, vector<128x128xf32>
      %c0_11 = arith.constant 0 : index
      %c0_12 = arith.constant 0 : index
      %16 = vector.load %arg4[%c0_11, %c0_12] : memref<1x128xf32, #tpu.memory_space<vmem>>, vector<1x128xf32>
      %17 = vector.broadcast %16 : vector<1x128xf32> to vector<128x128xf32>
      %18 = arith.addf %15, %17 : vector<128x128xf32>
      %19 = arith.negf %18 : vector<128x128xf32>
      %20 = math.exp %19 : vector<128x128xf32>
      %cst_13 = arith.constant 1.000000e+00 : f32
      %21 = vector.broadcast %cst_13 : f32 to vector<128x128xf32>
      %22 = arith.addf %21, %20 : vector<128x128xf32>
      %23 = arith.divf %21, %22 : vector<128x128xf32>
      %c0_14 = arith.constant 0 : index
      %c0_15 = arith.constant 0 : index
      %24 = vector.load %arg5[%c0_14, %c0_15] : memref<128x128xf32, #tpu.memory_space<vmem>>, vector<128x128xf32>
      tpu.vector_store %arg5[%c0_14, %c0_15], %23 {strides = array<i32>} : memref<128x128xf32, #tpu.memory_space<vmem>>, vector<128x128xf32>,
    } else {
    }
    return
  }
  func.func @transform_0(%arg0: i32, %arg1: i32) -> (i32, i32) {
    %c0_i32 = arith.constant 0 : i32
    return %arg0, %arg1 : i32, i32
  }
  func.func @transform_1(%arg0: i32, %arg1: i32) -> (i32, i32) {
    %c0_i32 = arith.constant 0 : i32
    %c0_i32_0 = arith.constant 0 : i32
    %c0_i32_1 = arith.constant 0 : i32
    return %c0_i32, %c0_i32_0 : i32, i32
  }
  func.func @transform_2(%arg0: i32, %arg1: i32) -> (i32, i32) {
    %c0_i32 = arith.constant 0 : i32
    %c0_i32_0 = arith.constant 0 : i32
    %c0_i32_1 = arith.constant 0 : i32
    return %c0_i32, %c0_i32_0 : i32, i32
  }
  func.func @transform_3(%arg0: i32, %arg1: i32) -> (i32, i32) {
    %c0_i32 = arith.constant 0 : i32
    %c0_i32_0 = arith.constant 0 : i32
    return %arg0, %c0_i32 : i32, i32
  }
}

</mosaic_0001>

<bundles_post_ra>
// kernel: _gcn_forward.7
= control target key start
LH: loop header
LB: loop body
LE: loop exit
PB: predicated region body
PF: predicated region fallthrough
CT: control target
= control target key end

     0   :  { %s821_s1 = inlined_call_operand.vmem [shape: f32[128,128], index: 1, kind: input, shape index: {}]   ;;  %s822_s0 = inlined_call_operand.vmem [shape: f32[128,128], index: 0, kind: input, shape index: {}]   ;;  %s823_s2 = inlined_call_operand.vmem [shape: f32[1,128], index: 2, kind: input, shape index: {}]   ;;  %s824_s3 = inlined_call_operand.vmem [shape: f32[128,128], index: 3, kind: output, shape index: {}]  }
   0x1   :  { %v36_v0 = vld [vmem:[%s821_s1] sm:$0xff]  ;;  %v37_v1 = vld [vmem:[%s821_s1 + $0x8] sm:$0xff]  ;;  %v38_v2 = vld [vmem:[%s821_s1 + $0x10] sm:$0xff] }
   0x2   :  { %v524_v3 = vpack.c.bf16 %v37_v1, %v36_v0  ;;  %v39_v4 = vld [vmem:[%s821_s1 + $0x18] sm:$0xff]  ;;  %v40_v6 = vld [vmem:[%s821_s1 + $0x20] sm:$0xff]  ;;  %v41_v7 = vld [vmem:[%s821_s1 + $0x28] sm:$0xff] }
   0x3   :  { %v528_v5 = vpack.c.bf16 %v39_v4, %v38_v2  ;;  %v532_v8 = vpack.c.bf16 %v41_v7, %v40_v6  ;;  %v68_v9 = vld [vmem:[%s822_s0] sm:$0xff]  ;;  %v42_v11 = vld [vmem:[%s821_s1 + $0x30] sm:$0xff]  ;;  %v43_v12 = vld [vmem:[%s821_s1 + $0x38] sm:$0xff] }
   0x4   :  { %525 = vmatprep.subr.bf16.mxu0 %v524_v3  ;;  %556 = vmatprep.subr.bf16.mxu1 %v524_v3  ;;  %v76_v10 = vld [vmem:[%s822_s0 + $0x40] sm:$0xff]  ;;  %v536_v13 = vpack.c.bf16 %v43_v12, %v42_v11  ;;  %v45_v15 = vld [vmem:[%s821_s1 + $0x48] sm:$0xff]  ;;  %v46_v17 = vld [vmem:[%s821_s1 + $0x50] sm:$0xff] }
   0x5   :  { %527 = vmatpush3.bf16.msra.mxu0 %v524_v3  ;;  %564 = vmatpush3.bf16.msra.mxu1 %v524_v3  ;;  %v44_v14 = vld [vmem:[%s821_s1 + $0x40] sm:$0xff]  ;;  %v47_v18 = vld [vmem:[%s821_s1 + $0x58] sm:$0xff]  ;;  %v49_v21 = vld [vmem:[%s821_s1 + $0x68] sm:$0xff] }
   0x6   :  { %529 = vmatprep.subr.bf16.mxu0 %v528_v5  ;;  %557 = vmatprep.subr.bf16.mxu1 %v528_v5  ;;  %v540_v16 = vpack.c.bf16 %v45_v15, %v44_v14  ;;  %v544_v19 = vpack.c.bf16 %v47_v18, %v46_v17  ;;  %v48_v20 = vld [vmem:[%s821_s1 + $0x60] sm:$0xff]  ;;  %v50_v23 = vld [vmem:[%s821_s1 + $0x70] sm:$0xff]  ;;  %v51_v24 = vld [vmem:[%s821_s1 + $0x78] sm:$0xff] }
   0x7   :  { %500 = vmatprep.mubr.f32.mxu0 %v68_v9  ;;  %512 = vmatprep.mubr.f32.mxu1 %v76_v10  ;;  %v548_v22 = vpack.c.bf16 %v49_v21, %v48_v20  ;;  %v552_v25 = vpack.c.bf16 %v51_v24, %v50_v23  ;;  %v69_v26 = vld [vmem:[%s822_s0 + $0x8] sm:$0xff]  ;;  %v70_v28 = vld [vmem:[%s822_s0 + $0x10] sm:$0xff]  ;;  %v71_v30 = vld [vmem:[%s822_s0 + $0x18] sm:$0xff] }
   0x8   :  { %v77_v27 = vld [vmem:[%s822_s0 + $0x48] sm:$0xff]  ;;  %v78_v29 = vld [vmem:[%s822_s0 + $0x50] sm:$0xff]  ;;  %v79_v31 = vld [vmem:[%s822_s0 + $0x58] sm:$0xff] }
   0x9   :  { %531 = vmatpush3.bf16.msra.mxu0 %v528_v5  ;;  %565 = vmatpush3.bf16.msra.mxu1 %v528_v5  ;;  %v72_v32 = vld [vmem:[%s822_s0 + $0x20] sm:$0xff]  ;;  %v73_v34 = vld [vmem:[%s822_s0 + $0x28] sm:$0xff]  ;;  %v74_v36 = vld [vmem:[%s822_s0 + $0x30] sm:$0xff] }
   0xa   :  { %533 = vmatprep.subr.bf16.mxu0 %v532_v8  ;;  %558 = vmatprep.subr.bf16.mxu1 %v532_v8  ;;  %v80_v33 = vld [vmem:[%s822_s0 + $0x60] sm:$0xff]  ;;  %v81_v35 = vld [vmem:[%s822_s0 + $0x68] sm:$0xff]  ;;  %v82_v37 = vld [vmem:[%s822_s0 + $0x70] sm:$0xff] }
   0xb   :  { %v75_v38 = vld [vmem:[%s822_s0 + $0x38] sm:$0xff]  ;;  %v755_v40 = vld [vmem:[%s823_s2] ss:$0 sm:$0xff] }
   0xc   :  { %v83_v39 = vld [vmem:[%s822_s0 + $0x78] sm:$0xff] }
   0xd   :  { %535 = vmatpush3.bf16.msra.mxu0 %v532_v8  ;;  %566 = vmatpush3.bf16.msra.mxu1 %v532_v8 }
   0xe   :  { %537 = vmatprep.subr.bf16.mxu0 %v536_v13  ;;  %559 = vmatprep.subr.bf16.mxu1 %v536_v13 }
  0x11   :  { %539 = vmatpush3.bf16.msra.mxu0 %v536_v13  ;;  %567 = vmatpush3.bf16.msra.mxu1 %v536_v13 }
  0x12   :  { %541 = vmatprep.subr.bf16.mxu0 %v540_v16  ;;  %560 = vmatprep.subr.bf16.mxu1 %v540_v16 }
  0x15   :  { %543 = vmatpush3.bf16.msra.mxu0 %v540_v16  ;;  %568 = vmatpush3.bf16.msra.mxu1 %v540_v16 }
  0x16   :  { %545 = vmatprep.subr.bf16.mxu0 %v544_v19  ;;  %561 = vmatprep.subr.bf16.mxu1 %v544_v19 }
  0x19   :  { %547 = vmatpush3.bf16.msra.mxu0 %v544_v19  ;;  %569 = vmatpush3.bf16.msra.mxu1 %v544_v19 }
  0x1a   :  { %549 = vmatprep.subr.bf16.mxu0 %v548_v22  ;;  %562 = vmatprep.subr.bf16.mxu1 %v548_v22 }
  0x1d   :  { %551 = vmatpush3.bf16.msra.mxu0 %v548_v22  ;;  %570 = vmatpush3.bf16.msra.mxu1 %v548_v22 }
  0x1e   :  { %553 = vmatprep.subr.bf16.mxu0 %v552_v25  ;;  %563 = vmatprep.subr.bf16.mxu1 %v552_v25 }
  0x21   :  { %555 = vmatpush3.bf16.msra.mxu0 %v552_v25  ;;  %571 = vmatpush3.bf16.msra.mxu1 %v552_v25 }
  0x24   :  { %501 = vmatmul.mubr.f32.vlgmr.msra.gmra.mrb[0].mxu0 %v69_v26  ;;  %513 = vmatmul.mubr.f32.vlgmr.msra.gmra.mrb[0].mxu1 %v77_v27 }
  0x25   :  { %503 = vmatprep.mubr.f32.mxu0 %v70_v28  ;;  %515 = vmatprep.mubr.f32.mxu1 %v78_v29 }
  0x28   :  { %504 = vmatmul.mubr.f32.gmra.mrb[2].mxu0 %v71_v30  ;;  %516 = vmatmul.mubr.f32.gmra.mrb[2].mxu1 %v79_v31 }
  0x29   :  { %506 = vmatprep.mubr.f32.mxu0 %v72_v32  ;;  %518 = vmatprep.mubr.f32.mxu1 %v80_v33 }
  0x2c   :  { %507 = vmatmul.mubr.f32.gmra.mrb[4].mxu0 %v73_v34  ;;  %519 = vmatmul.mubr.f32.gmra.mrb[4].mxu1 %v81_v35 }
  0x2d   :  { %509 = vmatprep.mubr.f32.mxu0 %v74_v36  ;;  %521 = vmatprep.mubr.f32.mxu1 %v82_v37 }
  0x30   :  { %510 = vmatmul.mubr.f32.gmra.mrb[6].mxu0 %v75_v38  ;;  %522 = vmatmul.mubr.f32.gmra.mrb[6].mxu1 %v83_v39 }
  0xf7   :  { %v502_v41 = vpop.f32.mrb[0].mxu0  ;;  %v514_v42 = vpop.f32.mrb[0].mxu1 }
  0xf8   :  { %v288_v43 = vadd.f32 %v502_v41, %v755_v40  ;;  %v296_v44 = vadd.f32 %v514_v42, %v755_v40  ;;  %v150_v45 = vpop.f32.mrb[1].mxu0  ;;  %v190_v46 = vpop.f32.mrb[1].mxu1 }
  0xf9   :  { %v287_v47 = vadd.f32 %v755_v40, %v150_v45  ;;  %v295_v48 = vadd.f32 %v755_v40, %v190_v46 }
  0xfa   :  { %v421_v49 = vmul.f32 -1.442695, %v288_v43  ;;  %v429_v50 = vmul.f32 -1.442695, %v296_v44 }
  0xfb   :  { %v420_v51 = vmul.f32 -1.442695, %v287_v47  ;;  %v428_v52 = vmul.f32 -1.442695, %v295_v48  ;;  %v505_v53 = vpop.f32.mrb[2].mxu0  ;;  %v517_v54 = vpop.f32.mrb[2].mxu1 }
  0xfc   :  { %572 = vpow2.f32 %v421_v49  ;;  %v290_v55 = vadd.f32 %v505_v53, %v755_v40  ;;  %v298_v56 = vadd.f32 %v517_v54, %v755_v40  ;;  %v160_v57 = vpop.f32.mrb[3].mxu0  ;;  %v200_v58 = vpop.f32.mrb[3].mxu1 }
  0xfd   :  { %574 = vpow2.f32 %v429_v50  ;;  %v289_v59 = vadd.f32 %v755_v40, %v160_v57  ;;  %v297_v60 = vadd.f32 %v755_v40, %v200_v58 }
  0xfe   :  { %576 = vpow2.f32 %v420_v51  ;;  %v423_v61 = vmul.f32 -1.442695, %v290_v55  ;;  %v431_v62 = vmul.f32 -1.442695, %v298_v56 }
  0xff   :  { %578 = vpow2.f32 %v428_v52  ;;  %v422_v63 = vmul.f32 -1.442695, %v289_v59  ;;  %v430_v0 = vmul.f32 -1.442695, %v297_v60  ;;  %v508_v1 = vpop.f32.mrb[4].mxu0  ;;  %v520_v2 = vpop.f32.mrb[4].mxu1 }
 0x100   :  { %580 = vpow2.f32 %v423_v61  ;;  %v292_v3 = vadd.f32 %v508_v1, %v755_v40  ;;  %v300_v4 = vadd.f32 %v520_v2, %v755_v40  ;;  %v170_v5 = vpop.f32.mrb[5].mxu0  ;;  %v210_v6 = vpop.f32.mrb[5].mxu1 }
 0x101   :  { %582 = vpow2.f32 %v431_v62  ;;  %v291_v7 = vadd.f32 %v755_v40, %v170_v5  ;;  %v299_v8 = vadd.f32 %v755_v40, %v210_v6 }
 0x102   :  { %584 = vpow2.f32 %v422_v63  ;;  %v425_v9 = vmul.f32 -1.442695, %v292_v3  ;;  %v433_v10 = vmul.f32 -1.442695, %v300_v4 }
 0x103   :  { %586 = vpow2.f32 %v430_v0  ;;  %v424_v11 = vmul.f32 -1.442695, %v291_v7  ;;  %v432_v12 = vmul.f32 -1.442695, %v299_v8  ;;  %v511_v13 = vpop.f32.mrb[6].mxu0  ;;  %v523_v14 = vpop.f32.mrb[6].mxu1 }
 0x104   :  { %588 = vpow2.f32 %v425_v9  ;;  %v294_v15 = vadd.f32 %v511_v13, %v755_v40  ;;  %v180_v16 = vpop.f32.mrb[7].mxu0  ;;  %v220_v17 = vpop.f32.mrb[7].mxu1  ;;  %v302_v36 = vadd.f32 %v523_v14, %v755_v40 }
 0x105   :  { %590 = vpow2.f32 %v433_v10  ;;  %v293_v39 = vadd.f32 %v755_v40, %v180_v16  ;;  %v301_v43 = vadd.f32 %v755_v40, %v220_v17 }
 0x106   :  { %v573_v18 = vpop.eup %572  ;;  %592 = vpow2.f32 %v424_v11  ;;  %v427_v19 = vmul.f32 -1.442695, %v294_v15  ;;  %v435_v48 = vmul.f32 -1.442695, %v302_v36 }
 0x107   :  { %v575_v20 = vpop.eup %574  ;;  %v352_v21 = vadd.f32 1.0, %v573_v18  ;;  %594 = vpow2.f32 %v432_v12  ;;  %v426_v51 = vmul.f32 -1.442695, %v293_v39  ;;  %v434_v53 = vmul.f32 -1.442695, %v301_v43 }
 0x108   :  { %v577_v22 = vpop.eup %576  ;;  %v360_v23 = vadd.f32 1.0, %v575_v20  ;;  %596 = vpow2.f32 %v427_v19 }
 0x109   :  { %v579_v24 = vpop.eup %578  ;;  %598 = vrcp.f32 %v352_v21  ;;  %v351_v25 = vadd.f32 1.0, %v577_v22 }
 0x10a   :  { %v581_v26 = vpop.eup %580  ;;  %600 = vrcp.f32 %v360_v23  ;;  %v359_v27 = vadd.f32 1.0, %v579_v24 }
 0x10b   :  { %v583_v28 = vpop.eup %582  ;;  %602 = vrcp.f32 %v351_v25  ;;  %v354_v29 = vadd.f32 1.0, %v581_v26 }
 0x10c   :  { %v585_v30 = vpop.eup %584  ;;  %604 = vrcp.f32 %v359_v27  ;;  %v362_v31 = vadd.f32 1.0, %v583_v28 }
 0x10d   :  { %v587_v32 = vpop.eup %586  ;;  %606 = vrcp.f32 %v354_v29  ;;  %v353_v33 = vadd.f32 1.0, %v585_v30 }
 0x10e   :  { %v589_v34 = vpop.eup %588  ;;  %608 = vrcp.f32 %v362_v31  ;;  %v361_v35 = vadd.f32 1.0, %v587_v32 }
 0x10f   :  { %v591_v37 = vpop.eup %590  ;;  %610 = vrcp.f32 %v353_v33  ;;  %v356_v38 = vadd.f32 1.0, %v589_v34 }
 0x110   :  { %v593_v41 = vpop.eup %592  ;;  %612 = vrcp.f32 %v361_v35  ;;  %v364_v42 = vadd.f32 1.0, %v591_v37 }
 0x111   :  { %v595_v44 = vpop.eup %594  ;;  %614 = vrcp.f32 %v356_v38  ;;  %v355_v45 = vadd.f32 1.0, %v593_v41 }
 0x112   :  { %v597_v46 = vpop.eup %596  ;;  %616 = vrcp.f32 %v364_v42  ;;  %v363_v47 = vadd.f32 1.0, %v595_v44 }
 0x113   :  { %v599_v49 = vpop.eup %598  ;;  %618 = vrcp.f32 %v355_v45  ;;  %v358_v50 = vadd.f32 1.0, %v597_v46 }
 0x114   :  { %v601_v52 = vpop.eup %600  ;;  %400 = vst [vmem:[%s824_s3 + $0x8] sm:$0xff] %v599_v49  ;;  %620 = vrcp.f32 %v363_v47 }
 0x115   :  { %v603_v54 = vpop.eup %602  ;;  %408 = vst [vmem:[%s824_s3 + $0x48] sm:$0xff] %v601_v52  ;;  %622 = vrcp.f32 %v358_v50 }
 0x116   :  { %v605_v40 = vpop.eup %604  ;;  %399 = vst [vmem:[%s824_s3] sm:$0xff] %v603_v54  ;;  %624 = vpow2.f32 %v435_v48 }
 0x117   :  { %v607_v55 = vpop.eup %606  ;;  %407 = vst [vmem:[%s824_s3 + $0x40] sm:$0xff] %v605_v40  ;;  %626 = vpow2.f32 %v426_v51 }
 0x118   :  { %v609_v56 = vpop.eup %608  ;;  %402 = vst [vmem:[%s824_s3 + $0x18] sm:$0xff] %v607_v55  ;;  %628 = vpow2.f32 %v434_v53 }
 0x119   :  { %v611_v57 = vpop.eup %610  ;;  %410 = vst [vmem:[%s824_s3 + $0x58] sm:$0xff] %v609_v56 }
 0x11a   :  { %v613_v58 = vpop.eup %612  ;;  %401 = vst [vmem:[%s824_s3 + $0x10] sm:$0xff] %v611_v57 }
 0x11b   :  { %v615_v59 = vpop.eup %614  ;;  %409 = vst [vmem:[%s824_s3 + $0x50] sm:$0xff] %v613_v58 }
 0x11c   :  { %v617_v60 = vpop.eup %616  ;;  %404 = vst [vmem:[%s824_s3 + $0x28] sm:$0xff] %v615_v59 }
 0x11d   :  { %v619_v61 = vpop.eup %618  ;;  %412 = vst [vmem:[%s824_s3 + $0x68] sm:$0xff] %v617_v60 }
 0x11e   :  { %v621_v62 = vpop.eup %620  ;;  %403 = vst [vmem:[%s824_s3 + $0x20] sm:$0xff] %v619_v61 }
 0x11f   :  { %v623_v63 = vpop.eup %622  ;;  %411 = vst [vmem:[%s824_s3 + $0x60] sm:$0xff] %v621_v62 }
 0x120   :  { %v625_v0 = vpop.eup %624  ;;  %406 = vst [vmem:[%s824_s3 + $0x38] sm:$0xff] %v623_v63 }
 0x121   :  { %v627_v1 = vpop.eup %626  ;;  %v366_v2 = vadd.f32 1.0, %v625_v0 }
 0x122   :  { %v629_v3 = vpop.eup %628  ;;  %v357_v4 = vadd.f32 1.0, %v627_v1 }
 0x123   :  { %630 = vrcp.f32 %v366_v2  ;;  %v365_v5 = vadd.f32 1.0, %v629_v3 }
 0x124   :  { %632 = vrcp.f32 %v357_v4 }
 0x125   :  { %634 = vrcp.f32 %v365_v5 }
 0x12d   :  { %v631_v6 = vpop.eup %630 }
 0x12e   :  { %v633_v7 = vpop.eup %632  ;;  %414 = vst [vmem:[%s824_s3 + $0x78] sm:$0xff] %v631_v6 }
 0x12f   :  { %v635_v8 = vpop.eup %634  ;;  %405 = vst [vmem:[%s824_s3 + $0x30] sm:$0xff] %v633_v7 }
 0x130   :  { %413 = vst [vmem:[%s824_s3 + $0x70] sm:$0xff] %v635_v8 }

// kernel: _gcn_forward.6
= control target key start
LH: loop header
LB: loop body
LE: loop exit
PB: predicated region body
PF: predicated region fallthrough
CT: control target
= control target key end

     0   :  { %s590_s1 = inlined_call_operand.vmem [shape: f32[128,128], index: 1, kind: input, shape index: {}]   ;;  %s591_s0 = inlined_call_operand.vmem [shape: f32[128,128], index: 0, kind: input, shape index: {}]   ;;  %s592_s2 = inlined_call_operand.vmem [shape: f32[128,128], index: 2, kind: output, shape index: {}]  }
   0x1   :  { %v63_v0 = vld [vmem:[%s590_s1] sm:$0xff]  ;;  %v64_v1 = vld [vmem:[%s590_s1 + $0x8] sm:$0xff]  ;;  %v65_v2 = vld [vmem:[%s590_s1 + $0x10] sm:$0xff] }
   0x2   :  { %v383_v3 = vpack.c.bf16 %v64_v1, %v63_v0  ;;  %v66_v4 = vld [vmem:[%s590_s1 + $0x18] sm:$0xff]  ;;  %v67_v6 = vld [vmem:[%s590_s1 + $0x20] sm:$0xff]  ;;  %v68_v7 = vld [vmem:[%s590_s1 + $0x28] sm:$0xff] }
   0x3   :  { %v387_v5 = vpack.c.bf16 %v66_v4, %v65_v2  ;;  %v391_v8 = vpack.c.bf16 %v68_v7, %v67_v6  ;;  %v47_v9 = vld [vmem:[%s591_s0] sm:$0xff]  ;;  %v69_v11 = vld [vmem:[%s590_s1 + $0x30] sm:$0xff]  ;;  %v70_v12 = vld [vmem:[%s590_s1 + $0x38] sm:$0xff] }
   0x4   :  { %384 = vmatprep.subr.bf16.mxu0 %v383_v3  ;;  %415 = vmatprep.subr.bf16.mxu1 %v383_v3  ;;  %v55_v10 = vld [vmem:[%s591_s0 + $0x40] sm:$0xff]  ;;  %v395_v13 = vpack.c.bf16 %v70_v12, %v69_v11  ;;  %v72_v15 = vld [vmem:[%s590_s1 + $0x48] sm:$0xff]  ;;  %v73_v17 = vld [vmem:[%s590_s1 + $0x50] sm:$0xff] }
   0x5   :  { %386 = vmatpush3.bf16.msra.mxu0 %v383_v3  ;;  %423 = vmatpush3.bf16.msra.mxu1 %v383_v3  ;;  %v71_v14 = vld [vmem:[%s590_s1 + $0x40] sm:$0xff]  ;;  %v74_v18 = vld [vmem:[%s590_s1 + $0x58] sm:$0xff]  ;;  %v76_v21 = vld [vmem:[%s590_s1 + $0x68] sm:$0xff] }
   0x6   :  { %388 = vmatprep.subr.bf16.mxu0 %v387_v5  ;;  %416 = vmatprep.subr.bf16.mxu1 %v387_v5  ;;  %v399_v16 = vpack.c.bf16 %v72_v15, %v71_v14  ;;  %v403_v19 = vpack.c.bf16 %v74_v18, %v73_v17  ;;  %v75_v20 = vld [vmem:[%s590_s1 + $0x60] sm:$0xff]  ;;  %v77_v23 = vld [vmem:[%s590_s1 + $0x70] sm:$0xff]  ;;  %v78_v24 = vld [vmem:[%s590_s1 + $0x78] sm:$0xff] }
   0x7   :  { %359 = vmatprep.mubr.f32.mxu0 %v47_v9  ;;  %371 = vmatprep.mubr.f32.mxu1 %v55_v10  ;;  %v407_v22 = vpack.c.bf16 %v76_v21, %v75_v20  ;;  %v411_v25 = vpack.c.bf16 %v78_v24, %v77_v23  ;;  %v48_v26 = vld [vmem:[%s591_s0 + $0x8] sm:$0xff]  ;;  %v49_v28 = vld [vmem:[%s591_s0 + $0x10] sm:$0xff]  ;;  %v50_v30 = vld [vmem:[%s591_s0 + $0x18] sm:$0xff] }
   0x8   :  { %v56_v27 = vld [vmem:[%s591_s0 + $0x48] sm:$0xff]  ;;  %v57_v29 = vld [vmem:[%s591_s0 + $0x50] sm:$0xff]  ;;  %v58_v31 = vld [vmem:[%s591_s0 + $0x58] sm:$0xff] }
   0x9   :  { %390 = vmatpush3.bf16.msra.mxu0 %v387_v5  ;;  %424 = vmatpush3.bf16.msra.mxu1 %v387_v5  ;;  %v51_v32 = vld [vmem:[%s591_s0 + $0x20] sm:$0xff]  ;;  %v52_v34 = vld [vmem:[%s591_s0 + $0x28] sm:$0xff]  ;;  %v53_v36 = vld [vmem:[%s591_s0 + $0x30] sm:$0xff] }
   0xa   :  { %392 = vmatprep.subr.bf16.mxu0 %v391_v8  ;;  %417 = vmatprep.subr.bf16.mxu1 %v391_v8  ;;  %v59_v33 = vld [vmem:[%s591_s0 + $0x60] sm:$0xff]  ;;  %v60_v35 = vld [vmem:[%s591_s0 + $0x68] sm:$0xff]  ;;  %v61_v37 = vld [vmem:[%s591_s0 + $0x70] sm:$0xff] }
   0xb   :  { %v54_v38 = vld [vmem:[%s591_s0 + $0x38] sm:$0xff] }
   0xc   :  { %v62_v39 = vld [vmem:[%s591_s0 + $0x78] sm:$0xff] }
   0xd   :  { %394 = vmatpush3.bf16.msra.mxu0 %v391_v8  ;;  %425 = vmatpush3.bf16.msra.mxu1 %v391_v8 }
   0xe   :  { %396 = vmatprep.subr.bf16.mxu0 %v395_v13  ;;  %418 = vmatprep.subr.bf16.mxu1 %v395_v13 }
  0x11   :  { %398 = vmatpush3.bf16.msra.mxu0 %v395_v13  ;;  %426 = vmatpush3.bf16.msra.mxu1 %v395_v13 }
  0x12   :  { %400 = vmatprep.subr.bf16.mxu0 %v399_v16  ;;  %419 = vmatprep.subr.bf16.mxu1 %v399_v16 }
  0x15   :  { %402 = vmatpush3.bf16.msra.mxu0 %v399_v16  ;;  %427 = vmatpush3.bf16.msra.mxu1 %v399_v16 }
  0x16   :  { %404 = vmatprep.subr.bf16.mxu0 %v403_v19  ;;  %420 = vmatprep.subr.bf16.mxu1 %v403_v19 }
  0x19   :  { %406 = vmatpush3.bf16.msra.mxu0 %v403_v19  ;;  %428 = vmatpush3.bf16.msra.mxu1 %v403_v19 }
  0x1a   :  { %408 = vmatprep.subr.bf16.mxu0 %v407_v22  ;;  %421 = vmatprep.subr.bf16.mxu1 %v407_v22 }
  0x1d   :  { %410 = vmatpush3.bf16.msra.mxu0 %v407_v22  ;;  %429 = vmatpush3.bf16.msra.mxu1 %v407_v22 }
  0x1e   :  { %412 = vmatprep.subr.bf16.mxu0 %v411_v25  ;;  %422 = vmatprep.subr.bf16.mxu1 %v411_v25 }
  0x21   :  { %414 = vmatpush3.bf16.msra.mxu0 %v411_v25  ;;  %430 = vmatpush3.bf16.msra.mxu1 %v411_v25 }
  0x24   :  { %360 = vmatmul.mubr.f32.vlgmr.msra.gmra.mrb[0].mxu0 %v48_v26  ;;  %372 = vmatmul.mubr.f32.vlgmr.msra.gmra.mrb[0].mxu1 %v56_v27 }
  0x25   :  { %362 = vmatprep.mubr.f32.mxu0 %v49_v28  ;;  %374 = vmatprep.mubr.f32.mxu1 %v57_v29 }
  0x28   :  { %363 = vmatmul.mubr.f32.gmra.mrb[2].mxu0 %v50_v30  ;;  %375 = vmatmul.mubr.f32.gmra.mrb[2].mxu1 %v58_v31 }
  0x29   :  { %365 = vmatprep.mubr.f32.mxu0 %v51_v32  ;;  %377 = vmatprep.mubr.f32.mxu1 %v59_v33 }
  0x2c   :  { %366 = vmatmul.mubr.f32.gmra.mrb[4].mxu0 %v52_v34  ;;  %378 = vmatmul.mubr.f32.gmra.mrb[4].mxu1 %v60_v35 }
  0x2d   :  { %368 = vmatprep.mubr.f32.mxu0 %v53_v36  ;;  %380 = vmatprep.mubr.f32.mxu1 %v61_v37 }
  0x30   :  { %369 = vmatmul.mubr.f32.gmra.mrb[6].mxu0 %v54_v38  ;;  %381 = vmatmul.mubr.f32.gmra.mrb[6].mxu1 %v62_v39 }
  0xf7   :  { %v361_v40 = vpop.f32.mrb[0].mxu0  ;;  %v373_v41 = vpop.f32.mrb[0].mxu1 }
  0xf8   :  { %276 = vst [vmem:[%s592_s2 + $0x8] sm:$0xff] %v361_v40  ;;  %284 = vst [vmem:[%s592_s2 + $0x48] sm:$0xff] %v373_v41  ;;  %v145_v42 = vpop.f32.mrb[1].mxu0  ;;  %v185_v43 = vpop.f32.mrb[1].mxu1 }
  0xf9   :  { %275 = vst [vmem:[%s592_s2] sm:$0xff] %v145_v42  ;;  %283 = vst [vmem:[%s592_s2 + $0x40] sm:$0xff] %v185_v43 }
  0xfb   :  { %v364_v44 = vpop.f32.mrb[2].mxu0  ;;  %v376_v45 = vpop.f32.mrb[2].mxu1 }
  0xfc   :  { %278 = vst [vmem:[%s592_s2 + $0x18] sm:$0xff] %v364_v44  ;;  %286 = vst [vmem:[%s592_s2 + $0x58] sm:$0xff] %v376_v45  ;;  %v155_v46 = vpop.f32.mrb[3].mxu0  ;;  %v195_v47 = vpop.f32.mrb[3].mxu1 }
  0xfd   :  { %277 = vst [vmem:[%s592_s2 + $0x10] sm:$0xff] %v155_v46  ;;  %285 = vst [vmem:[%s592_s2 + $0x50] sm:$0xff] %v195_v47 }
  0xff   :  { %v367_v48 = vpop.f32.mrb[4].mxu0  ;;  %v379_v49 = vpop.f32.mrb[4].mxu1 }
 0x100   :  { %280 = vst [vmem:[%s592_s2 + $0x28] sm:$0xff] %v367_v48  ;;  %288 = vst [vmem:[%s592_s2 + $0x68] sm:$0xff] %v379_v49  ;;  %v165_v50 = vpop.f32.mrb[5].mxu0  ;;  %v205_v51 = vpop.f32.mrb[5].mxu1 }
 0x101   :  { %279 = vst [vmem:[%s592_s2 + $0x20] sm:$0xff] %v165_v50  ;;  %287 = vst [vmem:[%s592_s2 + $0x60] sm:$0xff] %v205_v51 }
 0x103   :  { %v370_v52 = vpop.f32.mrb[6].mxu0  ;;  %v382_v53 = vpop.f32.mrb[6].mxu1 }
 0x104   :  { %282 = vst [vmem:[%s592_s2 + $0x38] sm:$0xff] %v370_v52  ;;  %290 = vst [vmem:[%s592_s2 + $0x78] sm:$0xff] %v382_v53  ;;  %v175_v54 = vpop.f32.mrb[7].mxu0  ;;  %v215_v55 = vpop.f32.mrb[7].mxu1 }
 0x105   :  { %281 = vst [vmem:[%s592_s2 + $0x30] sm:$0xff] %v175_v54  ;;  %289 = vst [vmem:[%s592_s2 + $0x70] sm:$0xff] %v215_v55 }

// kernel: _gcn_forward.5
= control target key start
LH: loop header
LB: loop body
LE: loop exit
PB: predicated region body
PF: predicated region fallthrough
CT: control target
= control target key end

     0   :  { %s643_s1 = inlined_call_operand.vmem [shape: f32[128,128], index: 1, kind: input, shape index: {}]   ;;  %s644_s0 = inlined_call_operand.vmem [shape: f32[128,128], index: 0, kind: input, shape index: {}]   ;;  %s645_s2 = inlined_call_operand.vmem [shape: f32[1,128], index: 2, kind: input, shape index: {}]   ;;  %s646_s3 = inlined_call_operand.vmem [shape: f32[128,128], index: 3, kind: output, shape index: {}]  }
   0x1   :  { %v36_v0 = vld [vmem:[%s643_s1] sm:$0xff]  ;;  %v37_v1 = vld [vmem:[%s643_s1 + $0x8] sm:$0xff]  ;;  %v38_v2 = vld [vmem:[%s643_s1 + $0x10] sm:$0xff] }
   0x2   :  { %v428_v3 = vpack.c.bf16 %v37_v1, %v36_v0  ;;  %v39_v4 = vld [vmem:[%s643_s1 + $0x18] sm:$0xff]  ;;  %v40_v6 = vld [vmem:[%s643_s1 + $0x20] sm:$0xff]  ;;  %v41_v7 = vld [vmem:[%s643_s1 + $0x28] sm:$0xff] }
   0x3   :  { %v432_v5 = vpack.c.bf16 %v39_v4, %v38_v2  ;;  %v436_v8 = vpack.c.bf16 %v41_v7, %v40_v6  ;;  %v68_v9 = vld [vmem:[%s644_s0] sm:$0xff]  ;;  %v42_v11 = vld [vmem:[%s643_s1 + $0x30] sm:$0xff]  ;;  %v43_v12 = vld [vmem:[%s643_s1 + $0x38] sm:$0xff] }
   0x4   :  { %429 = vmatprep.subr.bf16.mxu0 %v428_v3  ;;  %460 = vmatprep.subr.bf16.mxu1 %v428_v3  ;;  %v76_v10 = vld [vmem:[%s644_s0 + $0x40] sm:$0xff]  ;;  %v440_v13 = vpack.c.bf16 %v43_v12, %v42_v11  ;;  %v45_v15 = vld [vmem:[%s643_s1 + $0x48] sm:$0xff]  ;;  %v46_v17 = vld [vmem:[%s643_s1 + $0x50] sm:$0xff] }
   0x5   :  { %431 = vmatpush3.bf16.msra.mxu0 %v428_v3  ;;  %468 = vmatpush3.bf16.msra.mxu1 %v428_v3  ;;  %v44_v14 = vld [vmem:[%s643_s1 + $0x40] sm:$0xff]  ;;  %v47_v18 = vld [vmem:[%s643_s1 + $0x58] sm:$0xff]  ;;  %v49_v21 = vld [vmem:[%s643_s1 + $0x68] sm:$0xff] }
   0x6   :  { %433 = vmatprep.subr.bf16.mxu0 %v432_v5  ;;  %461 = vmatprep.subr.bf16.mxu1 %v432_v5  ;;  %v444_v16 = vpack.c.bf16 %v45_v15, %v44_v14  ;;  %v448_v19 = vpack.c.bf16 %v47_v18, %v46_v17  ;;  %v48_v20 = vld [vmem:[%s643_s1 + $0x60] sm:$0xff]  ;;  %v50_v23 = vld [vmem:[%s643_s1 + $0x70] sm:$0xff]  ;;  %v51_v24 = vld [vmem:[%s643_s1 + $0x78] sm:$0xff] }
   0x7   :  { %404 = vmatprep.mubr.f32.mxu0 %v68_v9  ;;  %416 = vmatprep.mubr.f32.mxu1 %v76_v10  ;;  %v452_v22 = vpack.c.bf16 %v49_v21, %v48_v20  ;;  %v456_v25 = vpack.c.bf16 %v51_v24, %v50_v23  ;;  %v69_v26 = vld [vmem:[%s644_s0 + $0x8] sm:$0xff]  ;;  %v70_v28 = vld [vmem:[%s644_s0 + $0x10] sm:$0xff]  ;;  %v71_v30 = vld [vmem:[%s644_s0 + $0x18] sm:$0xff] }
   0x8   :  { %v77_v27 = vld [vmem:[%s644_s0 + $0x48] sm:$0xff]  ;;  %v78_v29 = vld [vmem:[%s644_s0 + $0x50] sm:$0xff]  ;;  %v79_v31 = vld [vmem:[%s644_s0 + $0x58] sm:$0xff] }
   0x9   :  { %435 = vmatpush3.bf16.msra.mxu0 %v432_v5  ;;  %469 = vmatpush3.bf16.msra.mxu1 %v432_v5  ;;  %v72_v32 = vld [vmem:[%s644_s0 + $0x20] sm:$0xff]  ;;  %v73_v34 = vld [vmem:[%s644_s0 + $0x28] sm:$0xff]  ;;  %v74_v36 = vld [vmem:[%s644_s0 + $0x30] sm:$0xff] }
   0xa   :  { %437 = vmatprep.subr.bf16.mxu0 %v436_v8  ;;  %462 = vmatprep.subr.bf16.mxu1 %v436_v8  ;;  %v80_v33 = vld [vmem:[%s644_s0 + $0x60] sm:$0xff]  ;;  %v81_v35 = vld [vmem:[%s644_s0 + $0x68] sm:$0xff]  ;;  %v82_v37 = vld [vmem:[%s644_s0 + $0x70] sm:$0xff] }
   0xb   :  { %v75_v38 = vld [vmem:[%s644_s0 + $0x38] sm:$0xff]  ;;  %v339_v40 = vld [vmem:[%s645_s2] ss:$0 sm:$0xff] }
   0xc   :  { %v83_v39 = vld [vmem:[%s644_s0 + $0x78] sm:$0xff] }
   0xd   :  { %439 = vmatpush3.bf16.msra.mxu0 %v436_v8  ;;  %470 = vmatpush3.bf16.msra.mxu1 %v436_v8 }
   0xe   :  { %441 = vmatprep.subr.bf16.mxu0 %v440_v13  ;;  %463 = vmatprep.subr.bf16.mxu1 %v440_v13 }
  0x11   :  { %443 = vmatpush3.bf16.msra.mxu0 %v440_v13  ;;  %471 = vmatpush3.bf16.msra.mxu1 %v440_v13 }
  0x12   :  { %445 = vmatprep.subr.bf16.mxu0 %v444_v16  ;;  %464 = vmatprep.subr.bf16.mxu1 %v444_v16 }
  0x15   :  { %447 = vmatpush3.bf16.msra.mxu0 %v444_v16  ;;  %472 = vmatpush3.bf16.msra.mxu1 %v444_v16 }
  0x16   :  { %449 = vmatprep.subr.bf16.mxu0 %v448_v19  ;;  %465 = vmatprep.subr.bf16.mxu1 %v448_v19 }
  0x19   :  { %451 = vmatpush3.bf16.msra.mxu0 %v448_v19  ;;  %473 = vmatpush3.bf16.msra.mxu1 %v448_v19 }
  0x1a   :  { %453 = vmatprep.subr.bf16.mxu0 %v452_v22  ;;  %466 = vmatprep.subr.bf16.mxu1 %v452_v22 }
  0x1d   :  { %455 = vmatpush3.bf16.msra.mxu0 %v452_v22  ;;  %474 = vmatpush3.bf16.msra.mxu1 %v452_v22 }
  0x1e   :  { %457 = vmatprep.subr.bf16.mxu0 %v456_v25  ;;  %467 = vmatprep.subr.bf16.mxu1 %v456_v25 }
  0x21   :  { %459 = vmatpush3.bf16.msra.mxu0 %v456_v25  ;;  %475 = vmatpush3.bf16.msra.mxu1 %v456_v25 }
  0x24   :  { %405 = vmatmul.mubr.f32.vlgmr.msra.gmra.mrb[0].mxu0 %v69_v26  ;;  %417 = vmatmul.mubr.f32.vlgmr.msra.gmra.mrb[0].mxu1 %v77_v27 }
  0x25   :  { %407 = vmatprep.mubr.f32.mxu0 %v70_v28  ;;  %419 = vmatprep.mubr.f32.mxu1 %v78_v29 }
  0x28   :  { %408 = vmatmul.mubr.f32.gmra.mrb[2].mxu0 %v71_v30  ;;  %420 = vmatmul.mubr.f32.gmra.mrb[2].mxu1 %v79_v31 }
  0x29   :  { %410 = vmatprep.mubr.f32.mxu0 %v72_v32  ;;  %422 = vmatprep.mubr.f32.mxu1 %v80_v33 }
  0x2c   :  { %411 = vmatmul.mubr.f32.gmra.mrb[4].mxu0 %v73_v34  ;;  %423 = vmatmul.mubr.f32.gmra.mrb[4].mxu1 %v81_v35 }
  0x2d   :  { %413 = vmatprep.mubr.f32.mxu0 %v74_v36  ;;  %425 = vmatprep.mubr.f32.mxu1 %v82_v37 }
  0x30   :  { %414 = vmatmul.mubr.f32.gmra.mrb[6].mxu0 %v75_v38  ;;  %426 = vmatmul.mubr.f32.gmra.mrb[6].mxu1 %v83_v39 }
  0xf7   :  { %v406_v41 = vpop.f32.mrb[0].mxu0  ;;  %v418_v42 = vpop.f32.mrb[0].mxu1 }
  0xf8   :  { %v288_v43 = vadd.f32 %v406_v41, %v339_v40  ;;  %v296_v44 = vadd.f32 %v418_v42, %v339_v40  ;;  %v150_v45 = vpop.f32.mrb[1].mxu0  ;;  %v190_v46 = vpop.f32.mrb[1].mxu1 }
  0xf9   :  { %v287_v47 = vadd.f32 %v339_v40, %v150_v45  ;;  %v295_v48 = vadd.f32 %v339_v40, %v190_v46 }
  0xfa   :  { %v304_v49 = vmax.f32 %v288_v43, 0.0  ;;  %v312_v50 = vmax.f32 %v296_v44, 0.0 }
  0xfb   :  { %v303_v51 = vmax.f32 %v287_v47, 0.0  ;;  %v311_v52 = vmax.f32 %v295_v48, 0.0  ;;  %v409_v53 = vpop.f32.mrb[2].mxu0  ;;  %v421_v54 = vpop.f32.mrb[2].mxu1 }
  0xfc   :  { %320 = vst [vmem:[%s646_s3 + $0x8] sm:$0xff] %v304_v49  ;;  %328 = vst [vmem:[%s646_s3 + $0x48] sm:$0xff] %v312_v50  ;;  %v290_v55 = vadd.f32 %v409_v53, %v339_v40  ;;  %v298_v56 = vadd.f32 %v421_v54, %v339_v40  ;;  %v160_v57 = vpop.f32.mrb[3].mxu0  ;;  %v200_v58 = vpop.f32.mrb[3].mxu1 }
  0xfd   :  { %319 = vst [vmem:[%s646_s3] sm:$0xff] %v303_v51  ;;  %327 = vst [vmem:[%s646_s3 + $0x40] sm:$0xff] %v311_v52  ;;  %v289_v59 = vadd.f32 %v339_v40, %v160_v57  ;;  %v297_v60 = vadd.f32 %v339_v40, %v200_v58 }
  0xfe   :  { %v306_v61 = vmax.f32 %v290_v55, 0.0  ;;  %v314_v62 = vmax.f32 %v298_v56, 0.0 }
  0xff   :  { %v305_v63 = vmax.f32 %v289_v59, 0.0  ;;  %v313_v0 = vmax.f32 %v297_v60, 0.0  ;;  %v412_v1 = vpop.f32.mrb[4].mxu0  ;;  %v424_v2 = vpop.f32.mrb[4].mxu1 }
 0x100   :  { %322 = vst [vmem:[%s646_s3 + $0x18] sm:$0xff] %v306_v61  ;;  %330 = vst [vmem:[%s646_s3 + $0x58] sm:$0xff] %v314_v62  ;;  %v292_v3 = vadd.f32 %v412_v1, %v339_v40  ;;  %v300_v4 = vadd.f32 %v424_v2, %v339_v40  ;;  %v170_v5 = vpop.f32.mrb[5].mxu0  ;;  %v210_v6 = vpop.f32.mrb[5].mxu1 }
 0x101   :  { %321 = vst [vmem:[%s646_s3 + $0x10] sm:$0xff] %v305_v63  ;;  %329 = vst [vmem:[%s646_s3 + $0x50] sm:$0xff] %v313_v0  ;;  %v291_v7 = vadd.f32 %v339_v40, %v170_v5  ;;  %v299_v8 = vadd.f32 %v339_v40, %v210_v6 }
 0x102   :  { %v308_v9 = vmax.f32 %v292_v3, 0.0  ;;  %v316_v10 = vmax.f32 %v300_v4, 0.0 }
 0x103   :  { %v307_v11 = vmax.f32 %v291_v7, 0.0  ;;  %v315_v12 = vmax.f32 %v299_v8, 0.0  ;;  %v415_v13 = vpop.f32.mrb[6].mxu0  ;;  %v427_v14 = vpop.f32.mrb[6].mxu1 }
 0x104   :  { %324 = vst [vmem:[%s646_s3 + $0x28] sm:$0xff] %v308_v9  ;;  %332 = vst [vmem:[%s646_s3 + $0x68] sm:$0xff] %v316_v10  ;;  %v294_v15 = vadd.f32 %v415_v13, %v339_v40  ;;  %v302_v16 = vadd.f32 %v427_v14, %v339_v40  ;;  %v180_v17 = vpop.f32.mrb[7].mxu0  ;;  %v220_v18 = vpop.f32.mrb[7].mxu1 }
 0x105   :  { %323 = vst [vmem:[%s646_s3 + $0x20] sm:$0xff] %v307_v11  ;;  %331 = vst [vmem:[%s646_s3 + $0x60] sm:$0xff] %v315_v12  ;;  %v293_v19 = vadd.f32 %v339_v40, %v180_v17  ;;  %v301_v20 = vadd.f32 %v339_v40, %v220_v18 }
 0x106   :  { %v310_v21 = vmax.f32 %v294_v15, 0.0  ;;  %v318_v22 = vmax.f32 %v302_v16, 0.0 }
 0x107   :  { %v309_v23 = vmax.f32 %v293_v19, 0.0  ;;  %v317_v24 = vmax.f32 %v301_v20, 0.0 }
 0x108   :  { %326 = vst [vmem:[%s646_s3 + $0x38] sm:$0xff] %v310_v21  ;;  %334 = vst [vmem:[%s646_s3 + $0x78] sm:$0xff] %v318_v22 }
 0x109   :  { %325 = vst [vmem:[%s646_s3 + $0x30] sm:$0xff] %v309_v23  ;;  %333 = vst [vmem:[%s646_s3 + $0x70] sm:$0xff] %v317_v24 }

// kernel: _gcn_forward.4
= control target key start
LH: loop header
LB: loop body
LE: loop exit
PB: predicated region body
PF: predicated region fallthrough
CT: control target
= control target key end

     0   :  { %7 = vsyncpa [#allocation4], 0  ;;  %s473_s9 = smov [#allocation3]   ;;  %s599_s0 = inlined_call_operand.vmem [shape: f32[128,128], index: 0, kind: input, shape index: {}]   ;;  %s600_s1 = inlined_call_operand.hbm [shape: f32[128,128], index: 1, kind: input, shape index: {}]   ;;  %s601_s2 = inlined_call_operand.vmem [shape: f32[128,128], index: 2, kind: output, shape index: {}]  }
   0x1   :  { %s15_s10 = sshll.u32 %s473_s9, 4  ;;  %s449_s13 = scalar_lea.hbm %s600_s1, 2048  ;;  %s16_s10 = int_to_ptr.vmem [resolvable:$true] %s15_s10 }
   0x2   :  { %p450_p0 = scmp.ne.s32.totalorder %s600_s1, %s449_s13  ;;  %p453_p1 = scmp.lt.u32.totalorder %s449_s13, %s600_s1 }
   0x4   :  { %p455_p2 = pnand %p453_p1, %p450_p0 }
   0x6   :  { %458 = shalt.err (!%p455_p2)
}
   0x7   :  { %s459_s18 = scalar_lea.vmem %s16_s10, 2048  ;;  %p464_p4 = scmp.lt.s32.totalorder %s16_s10, %s16_s10 }
   0x8   :  { %p460_p3 = scmp.ne.s32.totalorder %s16_s10, %s459_s18  ;;  %p465_p5 = scmp.lt.s32.totalorder %s459_s18, %s459_s18 }
   0xa   :  { %p466_p6 = por %p465_p5, %p464_p4 }
   0xc   :  { %p467_p7 = pnand %p466_p6, %p460_p3 }
   0xe   :  { %470 = shalt.err (!%p467_p7)
}
   0xf   :  { %s474_s19 = smov 128   ;;  %s475_s20 = smov 8  }
  0x10   :  { %21 = dma.hbm_to_vmem [thread:$0]  %s600_s1, 2048, %s16_s10, [#allocation4], %s474_s19, %s474_s19, %s475_s20  }
  0x11   :  { %471 = dma.done.wait [#allocation4], 2048  }
  0x12   :  { %472 = vsyncadd [#allocation4], 4294965248  ;;  %v77_v0 = vld [vmem:[#allocation3] sm:$0xff]  ;;  %v78_v1 = vld [vmem:[#allocation3 + $0x8] sm:$0xff] }
  0x13   :  { %v79_v2 = vld [vmem:[#allocation3 + $0x10] sm:$0xff]  ;;  %v398_v3 = vpack.c.bf16 %v78_v1, %v77_v0  ;;  %v80_v4 = vld [vmem:[#allocation3 + $0x18] sm:$0xff]  ;;  %v81_v6 = vld [vmem:[#allocation3 + $0x20] sm:$0xff] }
  0x14   :  { %v402_v5 = vpack.c.bf16 %v80_v4, %v79_v2  ;;  %v82_v7 = vld [vmem:[#allocation3 + $0x28] sm:$0xff]  ;;  %v61_v9 = vld [vmem:[%s599_s0] sm:$0xff]  ;;  %v83_v11 = vld [vmem:[#allocation3 + $0x30] sm:$0xff] }
  0x15   :  { %399 = vmatprep.subr.bf16.mxu0 %v398_v3  ;;  %430 = vmatprep.subr.bf16.mxu1 %v398_v3  ;;  %v406_v8 = vpack.c.bf16 %v82_v7, %v81_v6  ;;  %v69_v10 = vld [vmem:[%s599_s0 + $0x40] sm:$0xff]  ;;  %v84_v12 = vld [vmem:[#allocation3 + $0x38] sm:$0xff]  ;;  %v86_v15 = vld [vmem:[#allocation3 + $0x48] sm:$0xff] }
  0x16   :  { %401 = vmatpush3.bf16.msra.mxu0 %v398_v3  ;;  %438 = vmatpush3.bf16.msra.mxu1 %v398_v3  ;;  %v410_v13 = vpack.c.bf16 %v84_v12, %v83_v11  ;;  %v85_v14 = vld [vmem:[#allocation3 + $0x40] sm:$0xff]  ;;  %v87_v17 = vld [vmem:[#allocation3 + $0x50] sm:$0xff]  ;;  %v88_v18 = vld [vmem:[#allocation3 + $0x58] sm:$0xff] }
  0x17   :  { %403 = vmatprep.subr.bf16.mxu0 %v402_v5  ;;  %431 = vmatprep.subr.bf16.mxu1 %v402_v5  ;;  %v414_v16 = vpack.c.bf16 %v86_v15, %v85_v14  ;;  %v418_v19 = vpack.c.bf16 %v88_v18, %v87_v17  ;;  %v89_v20 = vld [vmem:[#allocation3 + $0x60] sm:$0xff]  ;;  %v90_v21 = vld [vmem:[#allocation3 + $0x68] sm:$0xff]  ;;  %v91_v23 = vld [vmem:[#allocation3 + $0x70] sm:$0xff] }
  0x18   :  { %374 = vmatprep.mubr.f32.mxu0 %v61_v9  ;;  %386 = vmatprep.mubr.f32.mxu1 %v69_v10  ;;  %v422_v22 = vpack.c.bf16 %v90_v21, %v89_v20  ;;  %v92_v24 = vld [vmem:[#allocation3 + $0x78] sm:$0xff]  ;;  %v62_v26 = vld [vmem:[%s599_s0 + $0x8] sm:$0xff]  ;;  %v63_v28 = vld [vmem:[%s599_s0 + $0x10] sm:$0xff] }
  0x19   :  { %v426_v25 = vpack.c.bf16 %v92_v24, %v91_v23  ;;  %v70_v27 = vld [vmem:[%s599_s0 + $0x48] sm:$0xff]  ;;  %v71_v29 = vld [vmem:[%s599_s0 + $0x50] sm:$0xff]  ;;  %v64_v30 = vld [vmem:[%s599_s0 + $0x18] sm:$0xff] }
  0x1a   :  { %405 = vmatpush3.bf16.msra.mxu0 %v402_v5  ;;  %439 = vmatpush3.bf16.msra.mxu1 %v402_v5  ;;  %v72_v31 = vld [vmem:[%s599_s0 + $0x58] sm:$0xff]  ;;  %v65_v32 = vld [vmem:[%s599_s0 + $0x20] sm:$0xff]  ;;  %v66_v34 = vld [vmem:[%s599_s0 + $0x28] sm:$0xff] }
  0x1b   :  { %407 = vmatprep.subr.bf16.mxu0 %v406_v8  ;;  %432 = vmatprep.subr.bf16.mxu1 %v406_v8  ;;  %v73_v33 = vld [vmem:[%s599_s0 + $0x60] sm:$0xff]  ;;  %v74_v35 = vld [vmem:[%s599_s0 + $0x68] sm:$0xff]  ;;  %v67_v36 = vld [vmem:[%s599_s0 + $0x30] sm:$0xff] }
  0x1c   :  { %v75_v37 = vld [vmem:[%s599_s0 + $0x70] sm:$0xff]  ;;  %v68_v38 = vld [vmem:[%s599_s0 + $0x38] sm:$0xff] }
  0x1d   :  { %v76_v39 = vld [vmem:[%s599_s0 + $0x78] sm:$0xff] }
  0x1e   :  { %409 = vmatpush3.bf16.msra.mxu0 %v406_v8  ;;  %440 = vmatpush3.bf16.msra.mxu1 %v406_v8 }
  0x1f   :  { %411 = vmatprep.subr.bf16.mxu0 %v410_v13  ;;  %433 = vmatprep.subr.bf16.mxu1 %v410_v13 }
  0x22   :  { %413 = vmatpush3.bf16.msra.mxu0 %v410_v13  ;;  %441 = vmatpush3.bf16.msra.mxu1 %v410_v13 }
  0x23   :  { %415 = vmatprep.subr.bf16.mxu0 %v414_v16  ;;  %434 = vmatprep.subr.bf16.mxu1 %v414_v16 }
  0x26   :  { %417 = vmatpush3.bf16.msra.mxu0 %v414_v16  ;;  %442 = vmatpush3.bf16.msra.mxu1 %v414_v16 }
  0x27   :  { %419 = vmatprep.subr.bf16.mxu0 %v418_v19  ;;  %435 = vmatprep.subr.bf16.mxu1 %v418_v19 }
  0x2a   :  { %421 = vmatpush3.bf16.msra.mxu0 %v418_v19  ;;  %443 = vmatpush3.bf16.msra.mxu1 %v418_v19 }
  0x2b   :  { %423 = vmatprep.subr.bf16.mxu0 %v422_v22  ;;  %436 = vmatprep.subr.bf16.mxu1 %v422_v22 }
  0x2e   :  { %425 = vmatpush3.bf16.msra.mxu0 %v422_v22  ;;  %444 = vmatpush3.bf16.msra.mxu1 %v422_v22 }
  0x2f   :  { %427 = vmatprep.subr.bf16.mxu0 %v426_v25  ;;  %437 = vmatprep.subr.bf16.mxu1 %v426_v25 }
  0x32   :  { %429 = vmatpush3.bf16.msra.mxu0 %v426_v25  ;;  %445 = vmatpush3.bf16.msra.mxu1 %v426_v25 }
  0x35   :  { %375 = vmatmul.mubr.f32.vlgmr.msra.gmra.mrb[0].mxu0 %v62_v26  ;;  %387 = vmatmul.mubr.f32.vlgmr.msra.gmra.mrb[0].mxu1 %v70_v27 }
  0x36   :  { %377 = vmatprep.mubr.f32.mxu0 %v63_v28  ;;  %389 = vmatprep.mubr.f32.mxu1 %v71_v29 }
  0x39   :  { %378 = vmatmul.mubr.f32.gmra.mrb[2].mxu0 %v64_v30  ;;  %390 = vmatmul.mubr.f32.gmra.mrb[2].mxu1 %v72_v31 }
  0x3a   :  { %380 = vmatprep.mubr.f32.mxu0 %v65_v32  ;;  %392 = vmatprep.mubr.f32.mxu1 %v73_v33 }
  0x3d   :  { %381 = vmatmul.mubr.f32.gmra.mrb[4].mxu0 %v66_v34  ;;  %393 = vmatmul.mubr.f32.gmra.mrb[4].mxu1 %v74_v35 }
  0x3e   :  { %383 = vmatprep.mubr.f32.mxu0 %v67_v36  ;;  %395 = vmatprep.mubr.f32.mxu1 %v75_v37 }
  0x41   :  { %384 = vmatmul.mubr.f32.gmra.mrb[6].mxu0 %v68_v38  ;;  %396 = vmatmul.mubr.f32.gmra.mrb[6].mxu1 %v76_v39 }
 0x108   :  { %v376_v40 = vpop.f32.mrb[0].mxu0  ;;  %v388_v41 = vpop.f32.mrb[0].mxu1 }
 0x109   :  { %290 = vst [vmem:[%s601_s2 + $0x8] sm:$0xff] %v376_v40  ;;  %298 = vst [vmem:[%s601_s2 + $0x48] sm:$0xff] %v388_v41  ;;  %v159_v42 = vpop.f32.mrb[1].mxu0  ;;  %v199_v43 = vpop.f32.mrb[1].mxu1 }
 0x10a   :  { %289 = vst [vmem:[%s601_s2] sm:$0xff] %v159_v42  ;;  %297 = vst [vmem:[%s601_s2 + $0x40] sm:$0xff] %v199_v43 }
 0x10c   :  { %v379_v44 = vpop.f32.mrb[2].mxu0  ;;  %v391_v45 = vpop.f32.mrb[2].mxu1 }
 0x10d   :  { %292 = vst [vmem:[%s601_s2 + $0x18] sm:$0xff] %v379_v44  ;;  %300 = vst [vmem:[%s601_s2 + $0x58] sm:$0xff] %v391_v45  ;;  %v169_v46 = vpop.f32.mrb[3].mxu0  ;;  %v209_v47 = vpop.f32.mrb[3].mxu1 }
 0x10e   :  { %291 = vst [vmem:[%s601_s2 + $0x10] sm:$0xff] %v169_v46  ;;  %299 = vst [vmem:[%s601_s2 + $0x50] sm:$0xff] %v209_v47 }
 0x110   :  { %v382_v48 = vpop.f32.mrb[4].mxu0  ;;  %v394_v49 = vpop.f32.mrb[4].mxu1 }
 0x111   :  { %294 = vst [vmem:[%s601_s2 + $0x28] sm:$0xff] %v382_v48  ;;  %302 = vst [vmem:[%s601_s2 + $0x68] sm:$0xff] %v394_v49  ;;  %v179_v50 = vpop.f32.mrb[5].mxu0  ;;  %v219_v51 = vpop.f32.mrb[5].mxu1 }
 0x112   :  { %293 = vst [vmem:[%s601_s2 + $0x20] sm:$0xff] %v179_v50  ;;  %301 = vst [vmem:[%s601_s2 + $0x60] sm:$0xff] %v219_v51 }
 0x114   :  { %v385_v52 = vpop.f32.mrb[6].mxu0  ;;  %v397_v53 = vpop.f32.mrb[6].mxu1 }
 0x115   :  { %296 = vst [vmem:[%s601_s2 + $0x38] sm:$0xff] %v385_v52  ;;  %304 = vst [vmem:[%s601_s2 + $0x78] sm:$0xff] %v397_v53  ;;  %v189_v54 = vpop.f32.mrb[7].mxu0  ;;  %v229_v55 = vpop.f32.mrb[7].mxu1 }
 0x116   :  { %295 = vst [vmem:[%s601_s2 + $0x30] sm:$0xff] %v189_v54  ;;  %303 = vst [vmem:[%s601_s2 + $0x70] sm:$0xff] %v229_v55 }
 0x117   :  { %309 = vsyncpa [#allocation4], 1 }

</bundles_post_ra>
